<compile_context>
chip_gen: v7x
topology: tpu7x:2x2x1
jax: 0.10.0
libtpu: 0.0.40
codegen_flags: <defaults>
</compile_context>

<pallas_src>
import functools
import math

import jax
import jax.numpy as jnp
from jax.experimental import pallas as pl
from jax.experimental.pallas import tpu as pltpu


_VMEM_TILE_BUDGET = 24 * 1024 * 1024   # target working set when picking tiles
_VMEM_LIMIT_BYTES = 48 * 1024 * 1024   # explicit scoped-VMEM limit (fits v7x 64 MiB)


# ----------------------------------------------------------------------------- helpers
def _round_up(x, m):
    return (x + m - 1) // m * m


def _pad_dim(x, axis, new_size):
    pad = new_size - x.shape[axis]
    if pad == 0:
        return x
    widths = [(0, 0)] * x.ndim
    widths[axis] = (0, pad)
    return jnp.pad(x, widths)


def _compiler_params(semantics):
    return pltpu.CompilerParams(
        dimension_semantics=semantics, vmem_limit_bytes=_VMEM_LIMIT_BYTES
    )


def _pick_row_tile(rows, fits):
    """Largest multiple-of-8 row tile that fits the VMEM budget; the caller pads
    `rows` up to a multiple of the returned tile (never one giant fallback block)."""
    r8 = _round_up(rows, 8)
    if r8 <= 512 and fits(r8):
        return r8
    return next((t for t in (512, 256, 128, 64, 32, 16, 8) if fits(t)), 8)


# ----------------------------------------------------------------------------- kernel 1: fused X @ [W1 | W2 | ...] (no bias)
def _fused_linear_kernel(*refs, n_out):
    x_ref = refs[0]
    w_refs = refs[1:1 + n_out]
    o_refs = refs[1 + n_out:]
    x = x_ref[...]
    for w_ref, o_ref in zip(w_refs, o_refs):
        o_ref[...] = jnp.dot(
            x, w_ref[...], preferred_element_type=jnp.float32
        ).astype(o_ref.dtype)


def fused_linears(x2d, weights):
    """One row-tiled pallas_call computing x2d @ W for every W in `weights`.
    X is read from HBM once; the grid-invariant weights stay resident in VMEM."""
    R, Din = x2d.shape
    itemsize = x2d.dtype.itemsize
    w_bytes = 2 * sum(w.size * w.dtype.itemsize for w in weights)   # double-buffered
    out_cols = sum(w.shape[1] for w in weights)

    def fits(tr):
        return (w_bytes + 2 * tr * Din * itemsize
                + 2 * tr * out_cols * itemsize) <= _VMEM_TILE_BUDGET

    tr = _pick_row_tile(R, fits)
    rp = _round_up(R, tr)
    xp = _pad_dim(x2d, 0, rp)

    # TODO(synk): for very large d_model add an output-column grid axis so each
    # weight block is (Din, TN) instead of fully resident in VMEM.
    in_specs = [pl.BlockSpec((tr, Din), lambda r: (r, 0))]
    in_specs += [pl.BlockSpec(w.shape, lambda r: (0, 0)) for w in weights]
    out_specs = tuple(
        pl.BlockSpec((tr, w.shape[1]), lambda r: (r, 0)) for w in weights
    )
    out_shape = tuple(
        jax.ShapeDtypeStruct((rp, w.shape[1]), x2d.dtype) for w in weights
    )
    outs = pl.pallas_call(
        functools.partial(_fused_linear_kernel, n_out=len(weights)),
        out_shape=out_shape,
        grid_spec=pltpu.PrefetchScalarGridSpec(
            num_scalar_prefetch=0, grid=(rp // tr,),
            in_specs=in_specs, out_specs=out_specs),
        compiler_params=_compiler_params(("parallel",)),
    )(xp, *weights)
    return [o[:R] for o in outs]


# ----------------------------------------------------------------------------- kernel 2: attention core (all heads per step)
def _attention_body(q_ref, k_ref, v_ref, bias, attn_ref, ctx_ref,
                    heads, d_k, d_v, scale):
    # Fold 1/sqrt(d_k) into q: Sq*d_k multiplies instead of Sq*Sk.
    q = q_ref[0] * jnp.asarray(scale, q_ref.dtype)    # (TSq, heads*d_k)
    k = k_ref[0]                                      # (Sk,  heads*d_k)
    v = v_ref[0]                                      # (Sk,  heads*d_v)
    ctx_parts = []
    for h in range(heads):                            # static unroll, lane slices
        s = jax.lax.dot_general(
            q[:, h * d_k:(h + 1) * d_k], k[:, h * d_k:(h + 1) * d_k],
            (((1,), (1,)), ((), ())), preferred_element_type=jnp.float32)
        if bias is not None:                          # additive mask bias
            s = s + bias
        s = s - jnp.max(s, axis=-1, keepdims=True)
        p = jnp.exp(s)
        # Exact reciprocal keeps parity with the f32 reference; approx=True would
        # move the divide fully onto the otherwise-idle EUP slot.
        p = p * pl.reciprocal(jnp.sum(p, axis=-1, keepdims=True))
        attn_ref[0, h] = p.astype(attn_ref.dtype)
        ctx_parts.append(jnp.dot(p.astype(v.dtype), v[:, h * d_v:(h + 1) * d_v],
                                 preferred_element_type=jnp.float32))
    # Single lane-dense store of the already head-merged context.
    ctx_ref[0] = jnp.concatenate(ctx_parts, axis=-1).astype(ctx_ref.dtype)


def _attn_kernel(q_ref, k_ref, v_ref, attn_ref, ctx_ref, *, heads, d_k, d_v, scale):
    _attention_body(q_ref, k_ref, v_ref, None, attn_ref, ctx_ref,
                    heads, d_k, d_v, scale)


def _attn_masked_kernel(q_ref, k_ref, v_ref, bias_ref, attn_ref, ctx_ref, *,
                        heads, d_k, d_v, scale):
    _attention_body(q_ref, k_ref, v_ref, bias_ref[0].astype(jnp.float32),
                    attn_ref, ctx_ref, heads, d_k, d_v, scale)


def attention_core(qf, kf, vf, mask_bias, heads, d_k, d_v, scale):
    """qf: (B, Sq, H*d_k) folded; kf: (B, Sk, H*d_k); vf: (B, Sk, H*d_v);
    mask_bias: (B, Sq, Sk) additive f32 bias or None.
    Returns attn (B, H, Sq, Sk) and head-merged ctx (B, Sq, H*d_v)."""
    B, Sq, _ = qf.shape
    _, Sk, _ = kf.shape
    itemsize = qf.dtype.itemsize
    attn_dtype = qf.dtype

    kv_bytes = 2 * Sk * heads * (d_k + d_v) * itemsize       # K+V blocks (x2 buffers)

    def fits(t):
        need = kv_bytes
        need += 2 * t * heads * (d_k + d_v) * itemsize       # q + ctx blocks
        need += 2 * heads * t * Sk * attn_dtype.itemsize     # attn output block
        need += 2 * t * Sk * 4                               # score temp + bias block
        return need <= _VMEM_TILE_BUDGET

    # TODO(synk): Sk stays untiled because the module must return the full
    # (Sq, Sk) probability matrix; a flash-style online-softmax would apply if
    # only the context were needed.
    tsq = _pick_row_tile(Sq, fits)
    sqp = _round_up(Sq, tsq)

    args = [_pad_dim(qf, 1, sqp), kf, vf]
    in_specs = [
        pl.BlockSpec((1, tsq, heads * d_k), lambda b, t: (b, t, 0)),
        pl.BlockSpec((1, Sk, heads * d_k), lambda b, t: (b, 0, 0)),
        pl.BlockSpec((1, Sk, heads * d_v), lambda b, t: (b, 0, 0)),
    ]
    if mask_bias is not None:
        args.append(_pad_dim(mask_bias, 1, sqp))
        in_specs.append(pl.BlockSpec((1, tsq, Sk), lambda b, t: (b, t, 0)))
        kernel = functools.partial(_attn_masked_kernel,
                                   heads=heads, d_k=d_k, d_v=d_v, scale=scale)
    else:
        kernel = functools.partial(_attn_kernel,
                                   heads=heads, d_k=d_k, d_v=d_v, scale=scale)

    attn, ctx = pl.pallas_call(
        kernel,
        out_shape=(
            jax.ShapeDtypeStruct((B, heads, sqp, Sk), attn_dtype),
            jax.ShapeDtypeStruct((B, sqp, heads * d_v), qf.dtype),
        ),
        grid_spec=pltpu.PrefetchScalarGridSpec(
            num_scalar_prefetch=0,
            grid=(B, sqp // tsq),      # K/V block index constant over inner axis
            in_specs=in_specs,
            out_specs=(
                pl.BlockSpec((1, heads, tsq, Sk), lambda b, t: (b, 0, t, 0)),
                pl.BlockSpec((1, tsq, heads * d_v), lambda b, t: (b, t, 0)),
            ),
        ),
        compiler_params=_compiler_params(("parallel", "parallel")),
    )(*args)
    return attn[:, :, :Sq, :], ctx[:, :Sq, :]


# ----------------------------------------------------------------------------- kernel 3: out_proj + residual + LayerNorm
def _outproj_ln_kernel(x_ref, w_ref, b_ref, res_ref, g_ref, bt_ref, o_ref, *, eps):
    y = jnp.dot(x_ref[...], w_ref[...], preferred_element_type=jnp.float32)
    y = y + b_ref[...].astype(jnp.float32)
    # TODO(synk): nn.Dropout(0.2) omitted -- identity in eval/inference mode.
    z = y + res_ref[...].astype(jnp.float32)
    mu = jnp.mean(z, axis=-1, keepdims=True)
    var = jnp.mean(jnp.square(z - mu), axis=-1, keepdims=True)
    zn = (z - mu) * jax.lax.rsqrt(var + eps)
    o_ref[...] = (zn * g_ref[...].astype(jnp.float32)
                  + bt_ref[...].astype(jnp.float32)).astype(o_ref.dtype)


def outproj_residual_layernorm(ctx2d, w_o, b_o, residual2d, gamma, beta, eps=1e-6):
    R, HDV = ctx2d.shape
    _, Dm = w_o.shape
    itemsize = ctx2d.dtype.itemsize
    w_bytes = 2 * HDV * Dm * w_o.dtype.itemsize                  # resident, x2 buffers

    def fits(tr):
        return (w_bytes + 2 * tr * (HDV + 2 * Dm) * itemsize) <= _VMEM_TILE_BUDGET

    tr = _pick_row_tile(R, fits)
    rp = _round_up(R, tr)
    ctx_p = _pad_dim(ctx2d, 0, rp)
    res_p = _pad_dim(residual2d, 0, rp)

    out = pl.pallas_call(
        functools.partial(_outproj_ln_kernel, eps=eps),
        out_shape=jax.ShapeDtypeStruct((rp, Dm), ctx2d.dtype),
        grid_spec=pltpu.PrefetchScalarGridSpec(
            num_scalar_prefetch=0,
            grid=(rp // tr,),
            in_specs=[
                pl.BlockSpec((tr, HDV), lambda r: (r, 0)),
                pl.BlockSpec((HDV, Dm), lambda r: (0, 0)),   # W_o resident
                pl.BlockSpec((1, Dm), lambda r: (0, 0)),     # bias resident
                pl.BlockSpec((tr, Dm), lambda r: (r, 0)),    # residual rows
                pl.BlockSpec((1, Dm), lambda r: (0, 0)),     # gamma resident
                pl.BlockSpec((1, Dm), lambda r: (0, 0)),     # beta resident
            ],
            out_specs=pl.BlockSpec((tr, Dm), lambda r: (r, 0)),
        ),
        compiler_params=_compiler_params(("parallel",)),
    )(ctx_p, w_o, b_o, res_p, gamma, beta)
    return out[:R]


# ----------------------------------------------------------------------------- full forward
def multi_head_attention_forward(Q, K, V, params, *, heads, d_k, d_v, attn_mask=None):
    """Matches MultiHeadAttention.forward (eval mode): returns (output, attn)."""
    B, Sq, dmodel = Q.shape
    _, Sk, _ = K.shape

    # Q/K/V projections (bias=False). Arguments that are the same tensor share a
    # single pallas_call so the activation is read from HBM only once.
    if Q is K and K is V:
        q2, k2, v2 = fused_linears(Q.reshape(B * Sq, dmodel),
                                   [params["Wq"], params["Wk"], params["Wv"]])
    elif K is V:
        (q2,) = fused_linears(Q.reshape(B * Sq, dmodel), [params["Wq"]])
        k2, v2 = fused_linears(K.reshape(B * Sk, dmodel),
                               [params["Wk"], params["Wv"]])
    else:
        (q2,) = fused_linears(Q.reshape(B * Sq, dmodel), [params["Wq"]])
        (k2,) = fused_linears(K.reshape(B * Sk, dmodel), [params["Wk"]])
        (v2,) = fused_linears(V.reshape(B * Sk, dmodel), [params["Wv"]])

    # Attention consumes the folded (S, heads*d) layout and emits ctx already
    # head-merged: no split/merge transposes in the wrapper.
    qf = q2.reshape(B, Sq, heads * d_k)
    kf = k2.reshape(B, Sk, heads * d_k)
    vf = v2.reshape(B, Sk, heads * d_v)

    mask_bias = None
    if attn_mask is not None:
        # Additive (B, Sq, Sk) bias -- NOT replicated across heads in HBM.
        mask_bias = jnp.where(attn_mask == 0, jnp.float32(-1.0e9), jnp.float32(0.0))

    scale = 1.0 / math.sqrt(d_k)
    attn, ctx = attention_core(qf, kf, vf, mask_bias, heads, d_k, d_v, scale)

    out2d = outproj_residual_layernorm(
        ctx.reshape(B * Sq, heads * d_v), params["Wo"], params["bo"],
        Q.reshape(B * Sq, dmodel), params["gamma"], params["beta"], eps=1e-6)
    return out2d.reshape(B, Sq, dmodel), attn


# ----------------------------------------------------------------------------- params / reference
def init_params(key, heads, dmodel, d_k, d_v):
    ks = jax.random.split(key, 5)

    def xavier(k, fan_in, fan_out):
        bound = math.sqrt(6.0 / (fan_in + fan_out))
        return jax.random.uniform(k, (fan_in, fan_out), jnp.float32, -bound, bound)

    return dict(
        Wq=xavier(ks[0], dmodel, heads * d_k),
        Wk=xavier(ks[1], dmodel, heads * d_k),
        Wv=xavier(ks[2], dmodel, heads * d_v),
        Wo=xavier(ks[3], heads * d_v, dmodel),
        bo=jax.random.uniform(ks[4], (1, dmodel), jnp.float32, -0.1, 0.1),
        gamma=jnp.ones((1, dmodel), jnp.float32),
        beta=jnp.zeros((1, dmodel), jnp.float32),
    )


def reference_mha(Q, K, V, params, attn_mask, heads, d_k, d_v):
    B, Sq, dm = Q.shape
    Sk = K.shape[1]
    q = (Q.reshape(B * Sq, dm) @ params["Wq"]).reshape(B, Sq, heads, d_k).transpose(0, 2, 1, 3)
    k = (K.reshape(B * Sk, dm) @ params["Wk"]).reshape(B, Sk, heads, d_k).transpose(0, 2, 1, 3)
    v = (V.reshape(B * Sk, dm) @ params["Wv"]).reshape(B, Sk, heads, d_v).transpose(0, 2, 1, 3)
    s = jnp.einsum("bhqd,bhkd->bhqk", q, k) * (1.0 / math.sqrt(d_k))
    if attn_mask is not None:
        m = jnp.broadcast_to(attn_mask[:, None, :, :], (B, heads, Sq, Sk))
        s = jnp.where(m == 0, -1.0e9, s)
    p = jax.nn.softmax(s, axis=-1)
    ctx = jnp.einsum("bhqk,bhkd->bhqd", p, v).transpose(0, 2, 1, 3).reshape(B, Sq, heads * d_v)
    y = ctx @ params["Wo"] + params["bo"]
    z = y + Q
    mu = jnp.mean(z, -1, keepdims=True)
    var = jnp.mean((z - mu) ** 2, -1, keepdims=True)
    out = (z - mu) / jnp.sqrt(var + 1e-6) * params["gamma"] + params["beta"]
    return out, p


# ----------------------------------------------------------------------------- demo / check
if __name__ == "__main__":
    B, S, dmodel, heads, d_k, d_v = 2, 8, 32, 4, 8, 8

    root = jax.random.PRNGKey(0)
    kp, kq, kk, kv = jax.random.split(root, 4)
    params = init_params(kp, heads, dmodel, d_k, d_v)

    Q = jax.random.normal(kq, (B, S, dmodel), jnp.float32)
    K = jax.random.normal(kk, (B, S, dmodel), jnp.float32)
    V = jax.random.normal(kv, (B, S, dmodel), jnp.float32)
    # Padding-style mask: batch element 1 has its last 2 key positions masked out.
    attn_mask = jnp.ones((B, S, S), jnp.float32).at[1, :, 6:].set(0.0)

    # --- Cross-attention + mask (exercises the masked-attention path).
    out, attn = multi_head_attention_forward(
        Q, K, V, params, heads=heads, d_k=d_k, d_v=d_v, attn_mask=attn_mask)
    out, attn = jax.block_until_ready((out, attn))
    ref_out, ref_attn = reference_mha(Q, K, V, params, attn_mask, heads, d_k, d_v)
    assert out.shape == (B, S, dmodel)
    assert attn.shape == (B, heads, S, S)
    assert jnp.allclose(attn, ref_attn, atol=1e-5, rtol=1e-5)
    assert jnp.allclose(out, ref_out, atol=1e-4, rtol=1e-4)

    # --- Self-attention, no mask (exercises the fused Q/K/V projection path).
    out2, attn2 = multi_head_attention_forward(
        Q, Q, Q, params, heads=heads, d_k=d_k, d_v=d_v, attn_mask=None)
    out2, attn2 = jax.block_until_ready((out2, attn2))
    ref_out2, ref_attn2 = reference_mha(Q, Q, Q, params, None, heads, d_k, d_v)
    assert jnp.allclose(attn2, ref_attn2, atol=1e-5, rtol=1e-5)
    assert jnp.allclose(out2, ref_out2, atol=1e-4, rtol=1e-4)

    print("KERNEL_OK")
</pallas_src>

<mosaic_0001>
module attributes {stable_mosaic.version = 11 : i64} {
  func.func @_fused_linear_kernel(%arg0: i32, %arg1: memref<16x32xf32, #tpu.memory_space<vmem>>, %arg2: memref<32x32xf32, #tpu.memory_space<vmem>>, %arg3: memref<16x32xf32, #tpu.memory_space<vmem>>) attributes {dimension_semantics = [#tpu.dimension_semantics<parallel>], iteration_bounds = array<i64: 1>, scalar_prefetch = 0 : i64, scratch_operands = 0 : i64, tpu.core_type = #tpu.core_type<tc>, window_params = [{transform_indices = @transform_0, window_bounds = array<i64: 16, 32>}, {pipeline_mode = #tpu.pipeline_mode<synchronous>, transform_indices = @transform_1, window_bounds = array<i64: 32, 32>}, {transform_indices = @transform_2, window_bounds = array<i64: 16, 32>}]} {
    %c0 = arith.constant 0 : index
    %c0_0 = arith.constant 0 : index
    %0 = vector.load %arg1[%c0, %c0_0] : memref<16x32xf32, #tpu.memory_space<vmem>>, vector<16x32xf32>
    %c0_1 = arith.constant 0 : index
    %c0_2 = arith.constant 0 : index
    %1 = vector.load %arg2[%c0_1, %c0_2] : memref<32x32xf32, #tpu.memory_space<vmem>>, vector<32x32xf32>
    %cst = arith.constant dense<0.000000e+00> : vector<16x32xf32>
    %2 = tpu.matmul %0, %1, %cst {dimension_numbers = #tpu.dot_dimension_numbers<[1], [0], [0], [1], [0, 0, 1, 1], [], []>} : vector<16x32xf32>, vector<32x32xf32>, vector<16x32xf32> -> vector<16x32xf32>
    %c0_3 = arith.constant 0 : index
    %c0_4 = arith.constant 0 : index
    %3 = vector.load %arg3[%c0_3, %c0_4] : memref<16x32xf32, #tpu.memory_space<vmem>>, vector<16x32xf32>
    tpu.vector_store %arg3[%c0_3, %c0_4], %2 {strides = array<i32>} : memref<16x32xf32, #tpu.memory_space<vmem>>, vector<16x32xf32>,
    return
  }
  func.func @transform_0(%arg0: i32) -> (i32, i32) {
    %c0_i32 = arith.constant 0 : i32
    %c0_i32_0 = arith.constant 0 : i32
    return %arg0, %c0_i32 : i32, i32
  }
  func.func @transform_1(%arg0: i32) -> (i32, i32) {
    %c0_i32 = arith.constant 0 : i32
    %c0_i32_0 = arith.constant 0 : i32
    %c0_i32_1 = arith.constant 0 : i32
    return %c0_i32, %c0_i32_0 : i32, i32
  }
  func.func @transform_2(%arg0: i32) -> (i32, i32) {
    %c0_i32 = arith.constant 0 : i32
    %c0_i32_0 = arith.constant 0 : i32
    return %arg0, %c0_i32 : i32, i32
  }
}

</mosaic_0001>

<bundles_post_ra>
// kernel: tpu_custom_call.1
= control target key start
LH: loop header
LB: loop body
LE: loop exit
PB: predicated region body
PF: predicated region fallthrough
CT: control target
= control target key end

     0   :  { %7 = vsyncpa [#allocation3], 0  ;;  %s321_s0 = inlined_call_operand.hbm [shape: f32[16,32], index: 0, kind: input, shape index: {}]   ;;  %s322_s1 = inlined_call_operand.hbm [shape: f32[32,32], index: 1, kind: input, shape index: {}]   ;;  %s323_s2 = inlined_call_operand.hbm [shape: f32[16,32], index: 2, kind: output, shape index: {}]  }
   0x1   :  { %8 = vsyncpa [#allocation6], 0 }
   0x2   :  { %9 = vsyncpa [#allocation4], 0  ;;  %s252_s9 = smov [#allocation2]   ;;  %s180_s13 = scalar_lea.hbm %s321_s0, 256 }
   0x3   :  { %s15_s10 = sshll.u32 %s252_s9, 4  ;;  %p181_p0 = scmp.ne.s32.totalorder %s321_s0, %s180_s13  ;;  %s16_s10 = int_to_ptr.vmem [resolvable:$true] %s15_s10 }
   0x4   :  { %p184_p1 = scmp.lt.u32.totalorder %s180_s13, %s321_s0 }
   0x6   :  { %p186_p2 = pnand %p184_p1, %p181_p0 }
   0x8   :  { %189 = shalt.err (!%p186_p2)
}
   0x9   :  { %s190_s18 = scalar_lea.vmem %s16_s10, 256  ;;  %p195_p4 = scmp.lt.s32.totalorder %s16_s10, %s16_s10 }
   0xa   :  { %p191_p3 = scmp.ne.s32.totalorder %s16_s10, %s190_s18  ;;  %p196_p5 = scmp.lt.s32.totalorder %s190_s18, %s190_s18 }
   0xc   :  { %p197_p6 = por %p196_p5, %p195_p4 }
   0xe   :  { %p198_p7 = pnand %p197_p6, %p191_p3 }
  0x10   :  { %201 = shalt.err (!%p198_p7)
}
  0x11   :  { %s253_s19 = smov 128   ;;  %s254_s20 = smov 8  }
  0x12   :  { %21 = dma.hbm_to_vmem [thread:$0]  %s321_s0, 256, %s16_s10, [#allocation3], %s253_s19, %s253_s19, %s254_s20  }
  0x13   :  { %s255_s23 = smov [#allocation5]   ;;  %s202_s27 = scalar_lea.hbm %s322_s1, 512 }
  0x14   :  { %s27_s24 = sshll.u32 %s255_s23, 4  ;;  %p203_p8 = scmp.ne.s32.totalorder %s322_s1, %s202_s27  ;;  %s28_s24 = int_to_ptr.vmem [resolvable:$true] %s27_s24 }
  0x15   :  { %p206_p9 = scmp.lt.u32.totalorder %s202_s27, %s322_s1 }
  0x17   :  { %p208_p10 = pnand %p206_p9, %p203_p8 }
  0x19   :  { %211 = shalt.err (!%p208_p10)
}
  0x1a   :  { %s212_s4 = scalar_lea.vmem %s28_s24, 512  ;;  %p217_p12 = scmp.lt.s32.totalorder %s28_s24, %s28_s24 }
  0x1b   :  { %p213_p11 = scmp.ne.s32.totalorder %s28_s24, %s212_s4  ;;  %p218_p13 = scmp.lt.s32.totalorder %s212_s4, %s212_s4 }
  0x1d   :  { %p219_p0 = por %p218_p13, %p217_p12 }
  0x1f   :  { %p220_p1 = pnand %p219_p0, %p213_p11 }
  0x21   :  { %223 = shalt.err (!%p220_p1)
}
  0x22   :  { %33 = dma.hbm_to_vmem [thread:$0]  %s322_s1, 512, %s28_s24, [#allocation6], %s253_s19, %s253_s19, %s254_s20  }
  0x23   :  { %246 = dma.done.wait [#allocation3], 256  }
  0x24   :  { %247 = vsyncadd [#allocation3], 4294967040 }
  0x25   :  { %248 = dma.done.wait [#allocation6], 512  }
  0x26   :  { %249 = vsyncadd [#allocation6], 4294966784  ;;  %vm46_vm0 = vcmask 261120   ;;  %v42_v0 = vld [vmem:[#allocation5] sm:$0xff]  ;;  %v43_v1 = vld [vmem:[#allocation5 + $0x8] sm:$0xff]  ;;  %s256_s1 = smov [#allocation7]  }
  0x27   :  { %v44_v2 = vld [vmem:[#allocation5 + $0x10] sm:$0xff]  ;;  %v167_v3 = vpack.c.bf16 %v43_v1, %v42_v0  ;;  %v45_v4 = vld [vmem:[#allocation5 + $0x18] sm:$0xff]  ;;  %s135_s6 = sshll.u32 %s256_s1, 4  ;;  %s136_s6 = int_to_ptr.vmem [resolvable:$true] %s135_s6 }
  0x28   :  { %v40_v5 = vld [vmem:[#allocation2] sm:$0xff]  ;;  %v171_v6 = vpack.c.bf16 %v45_v4, %v44_v2  ;;  %v41_v7 = vld [vmem:[#allocation2 + $0x8] sm:$0xff]  ;;  %s224_s7 = scalar_lea.vmem %s136_s6, 256  ;;  %p229_p3 = scmp.lt.s32.totalorder %s136_s6, %s136_s6 }
  0x29   :  { %164 = vmatprep.mubr.msk.f32.mxu0 %vm46_vm0, %v40_v5  ;;  %168 = vmatprep.subr.bf16.mxu0 %v167_v3  ;;  %p225_p2 = scmp.ne.s32.totalorder %s136_s6, %s224_s7  ;;  %p230_p4 = scmp.lt.s32.totalorder %s224_s7, %s224_s7 }
  0x2a   :  { %170 = vmatpush3.bf16.msra.mxu0 %v167_v3 }
  0x2b   :  { %172 = vmatprep.subr.bf16.mxu0 %v171_v6  ;;  %p231_p5 = por %p230_p4, %p229_p3 }
  0x2d   :  { %p232_p6 = pnand %p231_p5, %p225_p2 }
  0x2e   :  { %174 = vmatpush3.bf16.msra.mxu0 %v171_v6 }
  0x31   :  { %165 = vmatmul.mubr.msk.f32.vlgmr.msra.gmra.mrb[0].mxu0 %vm46_vm0, %v41_v7 }
 0x104   :  { %v166_v8 = vpop.f32.mrb[0].mxu0 }
 0x105   :  { %129 = vst.msk [vmem:[#allocation7 + $0x8] sm:$0xff] %vm46_vm0, %v166_v8  ;;  %v119_v9 = vpop.f32.mrb[1].mxu0 }
 0x106   :  { %128 = vst.msk [vmem:[#allocation7] sm:$0xff] %vm46_vm0, %v119_v9 }
 0x107   :  { %235 = shalt.err (!%p232_p6)
}
 0x108   :  { %s236_s10 = scalar_lea.hbm %s323_s2, 256 }
 0x109   :  { %p237_p7 = scmp.ne.s32.totalorder %s323_s2, %s236_s10  ;;  %p240_p8 = scmp.lt.u32.totalorder %s236_s10, %s323_s2 }
 0x10b   :  { %p242_p9 = pnand %p240_p8, %p237_p7 }
 0x10d   :  { %245 = shalt.err (!%p242_p9)
}
 0x10e   :  { %141 = dma.vmem_to_hbm [thread:$0]  %s136_s6, 256, %s323_s2, [#allocation4], %s253_s19, %s253_s19, %s254_s20  }
 0x10f   :  { %250 = dma.done.wait [#allocation4], 256  }
 0x110   :  { %251 = vsyncadd [#allocation4], 4294967040 }
 0x111   :  { %145 = vsyncpa [#allocation3], 1 }
 0x112   :  { %146 = vsyncpa [#allocation6], 1 }
 0x113   :  { %147 = vsyncpa [#allocation4], 1 }

</bundles_post_ra>
